<compile_context>
chip_gen: v6e
topology: v6e:2x2x1
jax: 0.10.0
libtpu: 0.0.40
codegen_flags: <defaults>
</compile_context>

<pallas_src>
import functools

import jax
import jax.numpy as jnp
from jax.experimental import pallas as pl
from jax.experimental.pallas import tpu as pltpu


def _se_kernel(x_ref, w1t_ref, w2t_ref, o_ref, *, inv_hw):
    # x_ref: (Bt, C, HW)  w1t_ref: (C, Cr)  w2t_ref: (Cr, C)  o_ref: (Bt, C, HW)
    #
    # Global average pool in f32.  The block's last dim is the full logical HW
    # extent, so the reduction only touches real lanes (no padding to mask).
    pooled = jnp.sum(x_ref[...].astype(jnp.float32), axis=-1) * inv_hw     # (Bt, C)
    # fc1 (bias-free) + ReLU; weights are pre-transposed on the host, so no
    # in-kernel XLU transpose for loop-invariant weights.
    h = jnp.dot(pooled, w1t_ref[...], preferred_element_type=jnp.float32)  # (Bt, Cr)
    h = jnp.maximum(h, 0.0)
    # fc2 (bias-free) + Sigmoid
    s = jnp.dot(h, w2t_ref[...], preferred_element_type=jnp.float32)       # (Bt, C)
    s = jax.nn.sigmoid(s)
    # Channel-wise rescale.  Re-read x from VMEM and multiply in the input
    # dtype (s cast once) so no slab-sized f32 temporary stays live across the
    # FC math above.
    # TODO(synk): on v5e with bf16 inputs an f32 multiply path would be needed
    # for full-precision parity (v5e VPU has no native bf16 multiply).
    o_ref[...] = x_ref[...] * s.astype(o_ref.dtype)[:, :, None]


def _vmem_params():
    """Generation-aware VMEM budgeting -> (slab packing budget, vmem_limit cap)."""
    try:
        info = pltpu.get_tpu_info()
        cap = getattr(info, "vmem_capacity_bytes", 64 * 1024 * 1024)
    except Exception:
        cap = 64 * 1024 * 1024                       # assume the tightest chip
    if cap >= 100 * 1024 * 1024:                     # v5e / v6e: 128 MiB physical
        return 56 * 1024 * 1024, 96 * 1024 * 1024
    return 36 * 1024 * 1024, 48 * 1024 * 1024        # v7x: 64 MiB per TensorCore


def _pick_batch_tile(B, bytes_per_batch, vmem_budget_bytes,
                     min_steps=4, slab_floor=1 << 20):
    """Batch-packing that keeps double-buffered in+out slabs within budget while
    guaranteeing pipeline depth (>=min_steps when slabs stay >= slab_floor, and
    always >=2 grid steps when B >= 2 so both v7x TensorCores get work)."""
    max_bt = max(1, vmem_budget_bytes // (4 * bytes_per_batch))  # 2-buf in + 2-buf out
    bt = min(B, max_bt)
    while B % bt:
        bt -= 1
    # Trade slab size for pipeline depth as long as slabs stay >= ~1 MiB
    # (per-step overhead ~0.35us is negligible at that size).
    while (B // bt) < min_steps and bt > 1 and (bt // 2) * bytes_per_batch >= slab_floor:
        nbt = bt // 2
        while B % nbt:
            nbt -= 1
        bt = nbt
    # Always expose >= 2 grid steps when B >= 2 (v7x has 2 TCs; a 1-step grid
    # idles one of them, and 2 steps also enables minimal double-buffering).
    if B >= 2 and (B // bt) < 2:
        nbt = B // 2
        while B % nbt:
            nbt -= 1
        bt = nbt
    return bt


def se_block(x, w1, w2):
    """x: (B, C, H, W); w1: (C//r, C); w2: (C, C//r) — PyTorch Linear weight layout."""
    B, C, H, W = x.shape
    Cr = w1.shape[0]
    HW = H * W

    # No padding and no trailing slice: the kernel block spans the full HW
    # extent directly (Mosaic masks the tail vreg).
    x_flat = x.reshape(B, C, HW)

    # Hoisted (host-side, free) transposes — kernel consumes (C, Cr) and (Cr, C).
    w1t = jnp.transpose(w1)                    # (C, Cr)
    w2t = jnp.transpose(w2)                    # (Cr, C)

    itemsize = jnp.dtype(x.dtype).itemsize
    bytes_per_batch = C * HW * itemsize
    vmem_budget, vmem_cap = _vmem_params()
    Bt = _pick_batch_tile(B, bytes_per_batch, vmem_budget)
    # TODO(synk): if a single (C, HW) slab ever exceeds the VMEM budget, switch to a
    # two-pass spatially-tiled variant (pool-accumulate pass + rescale pass).

    grid = (B // Bt,)
    slab_bytes = Bt * bytes_per_batch
    weight_bytes = 2 * C * Cr * jnp.dtype(w1.dtype).itemsize
    # 2-buffered input slab + 2-buffered output slab + resident weights + headroom.
    vmem_needed = 4 * slab_bytes + 2 * weight_bytes + (2 << 20)
    vmem_limit = int(min(vmem_cap, max(vmem_needed, 16 * 1024 * 1024)))

    cost = pl.CostEstimate(
        flops=2 * B * C * HW + 4 * B * C * Cr,
        transcendentals=B * C,                 # sigmoid
        bytes_accessed=2 * B * C * HW * itemsize + weight_bytes,
    )

    kernel = functools.partial(_se_kernel, inv_hw=1.0 / HW)

    out = pl.pallas_call(
        kernel,
        out_shape=jax.ShapeDtypeStruct((B, C, HW), x.dtype),
        grid_spec=pltpu.PrefetchScalarGridSpec(
            num_scalar_prefetch=0,
            grid=grid,
            in_specs=[
                pl.BlockSpec((Bt, C, HW), lambda b: (b, 0, 0)),   # batched slab
                pl.BlockSpec((C, Cr), lambda b: (0, 0)),          # fc1 weight (resident)
                pl.BlockSpec((Cr, C), lambda b: (0, 0)),          # fc2 weight (resident)
            ],
            out_specs=pl.BlockSpec((Bt, C, HW), lambda b: (b, 0, 0)),
        ),
        compiler_params=pltpu.CompilerParams(
            dimension_semantics=("parallel",),
            vmem_limit_bytes=vmem_limit,
        ),
        cost_estimate=cost,
    )(x_flat, w1t, w2t)

    return out.reshape(B, C, H, W)


def se_block_ref(x, w1, w2):
    """Pure-JAX reference mirroring the PyTorch forward."""
    y = jnp.mean(x, axis=(2, 3))                  # (B, C)
    y = jnp.maximum(y @ w1.T, 0.0)                # (B, C//r)
    y = jax.nn.sigmoid(y @ w2.T)                  # (B, C)
    return x * y[:, :, None, None]


if __name__ == "__main__":
    # SEBlock(channel=16, reduction=8); HW=196 (not a 128 multiple) exercises the
    # masked full-extent last-dim block.
    B, C, H, W = 4, 16, 14, 14
    reduction = 8
    Cr = C // reduction

    key = jax.random.PRNGKey(0)
    kx, k1, k2 = jax.random.split(key, 3)
    x = jax.random.normal(kx, (B, C, H, W), dtype=jnp.float32)
    # Deterministic init ~ PyTorch Linear default: U(-1/sqrt(fan_in), 1/sqrt(fan_in)).
    w1 = jax.random.uniform(k1, (Cr, C), jnp.float32, -1.0, 1.0) / jnp.sqrt(C)
    w2 = jax.random.uniform(k2, (C, Cr), jnp.float32, -1.0, 1.0) / jnp.sqrt(Cr)

    out = jax.jit(se_block)(x, w1, w2)
    out = jax.block_until_ready(out)

    ref = se_block_ref(x, w1, w2)
    assert out.shape == (B, C, H, W)
    assert jnp.allclose(out, ref, atol=1e-5, rtol=1e-5), "mismatch vs reference"
    print("KERNEL_OK")
</pallas_src>

<mosaic_0001>
module attributes {stable_mosaic.version = 11 : i64} {
  func.func @_se_kernel(%arg0: i32, %arg1: memref<2x16x196xf32, #tpu.memory_space<vmem>>, %arg2: memref<16x2xf32, #tpu.memory_space<vmem>>, %arg3: memref<2x16xf32, #tpu.memory_space<vmem>>, %arg4: memref<2x16x196xf32, #tpu.memory_space<vmem>>) attributes {dimension_semantics = [#tpu.dimension_semantics<parallel>], iteration_bounds = array<i64: 2>, scalar_prefetch = 0 : i64, scratch_operands = 0 : i64, tpu.core_type = #tpu.core_type<tc>, window_params = [{transform_indices = @transform_0, window_bounds = array<i64: 2, 16, 196>}, {pipeline_mode = #tpu.pipeline_mode<synchronous>, transform_indices = @transform_1, window_bounds = array<i64: 16, 2>}, {pipeline_mode = #tpu.pipeline_mode<synchronous>, transform_indices = @transform_2, window_bounds = array<i64: 2, 16>}, {transform_indices = @transform_3, window_bounds = array<i64: 2, 16, 196>}]} {
    %c0 = arith.constant 0 : index
    %c0_0 = arith.constant 0 : index
    %c0_1 = arith.constant 0 : index
    %0 = vector.load %arg1[%c0, %c0_0, %c0_1] : memref<2x16x196xf32, #tpu.memory_space<vmem>>, vector<2x16x196xf32>
    %cst = arith.constant dense<0.000000e+00> : vector<2x16xf32>
    %1 = vector.multi_reduction <add>, %0, %cst [2] : vector<2x16x196xf32> to vector<2x16xf32>
    %cst_2 = arith.constant 0.00510204071 : f32
    %2 = vector.broadcast %cst_2 : f32 to vector<2x16xf32>
    %3 = arith.mulf %1, %2 : vector<2x16xf32>
    %c0_3 = arith.constant 0 : index
    %c0_4 = arith.constant 0 : index
    %4 = vector.load %arg2[%c0_3, %c0_4] : memref<16x2xf32, #tpu.memory_space<vmem>>, vector<16x2xf32>
    %cst_5 = arith.constant dense<0.000000e+00> : vector<2x2xf32>
    %5 = tpu.matmul %3, %4, %cst_5 {dimension_numbers = #tpu.dot_dimension_numbers<[1], [0], [0], [1], [0, 0, 1, 1], [], []>} : vector<2x16xf32>, vector<16x2xf32>, vector<2x2xf32> -> vector<2x2xf32>
    %cst_6 = arith.constant 0.000000e+00 : f32
    %6 = vector.broadcast %cst_6 : f32 to vector<2x2xf32>
    %7 = arith.maximumf %5, %6 : vector<2x2xf32>
    %c0_7 = arith.constant 0 : index
    %c0_8 = arith.constant 0 : index
    %8 = vector.load %arg3[%c0_7, %c0_8] : memref<2x16xf32, #tpu.memory_space<vmem>>, vector<2x16xf32>
    %cst_9 = arith.constant dense<0.000000e+00> : vector<2x16xf32>
    %9 = tpu.matmul %7, %8, %cst_9 {dimension_numbers = #tpu.dot_dimension_numbers<[1], [0], [0], [1], [0, 0, 1, 1], [], []>} : vector<2x2xf32>, vector<2x16xf32>, vector<2x16xf32> -> vector<2x16xf32>
    %10 = arith.negf %9 : vector<2x16xf32>
    %11 = math.exp %10 : vector<2x16xf32>
    %cst_10 = arith.constant 1.000000e+00 : f32
    %12 = vector.broadcast %cst_10 : f32 to vector<2x16xf32>
    %13 = arith.addf %12, %11 : vector<2x16xf32>
    %14 = arith.divf %12, %13 : vector<2x16xf32>
    %c0_11 = arith.constant 0 : index
    %c0_12 = arith.constant 0 : index
    %c0_13 = arith.constant 0 : index
    %15 = vector.load %arg1[%c0_11, %c0_12, %c0_13] : memref<2x16x196xf32, #tpu.memory_space<vmem>>, vector<2x16x196xf32>
    %16 = vector.shape_cast %14 : vector<2x16xf32> to vector<2x16x1xf32>
    %17 = vector.broadcast %16 : vector<2x16x1xf32> to vector<2x16x196xf32>
    %18 = arith.mulf %15, %17 : vector<2x16x196xf32>
    %c0_14 = arith.constant 0 : index
    %c0_15 = arith.constant 0 : index
    %c0_16 = arith.constant 0 : index
    %19 = vector.load %arg4[%c0_14, %c0_15, %c0_16] : memref<2x16x196xf32, #tpu.memory_space<vmem>>, vector<2x16x196xf32>
    tpu.vector_store %arg4[%c0_14, %c0_15, %c0_16], %18 {strides = array<i32>} : memref<2x16x196xf32, #tpu.memory_space<vmem>>, vector<2x16x196xf32>,
    return
  }
  func.func @transform_0(%arg0: i32) -> (i32, i32, i32) {
    %c0_i32 = arith.constant 0 : i32
    %c0_i32_0 = arith.constant 0 : i32
    %c0_i32_1 = arith.constant 0 : i32
    return %arg0, %c0_i32, %c0_i32_0 : i32, i32, i32
  }
  func.func @transform_1(%arg0: i32) -> (i32, i32) {
    %c0_i32 = arith.constant 0 : i32
    %c0_i32_0 = arith.constant 0 : i32
    %c0_i32_1 = arith.constant 0 : i32
    return %c0_i32, %c0_i32_0 : i32, i32
  }
  func.func @transform_2(%arg0: i32) -> (i32, i32) {
    %c0_i32 = arith.constant 0 : i32
    %c0_i32_0 = arith.constant 0 : i32
    %c0_i32_1 = arith.constant 0 : i32
    return %c0_i32, %c0_i32_0 : i32, i32
  }
  func.func @transform_3(%arg0: i32) -> (i32, i32, i32) {
    %c0_i32 = arith.constant 0 : i32
    %c0_i32_0 = arith.constant 0 : i32
    %c0_i32_1 = arith.constant 0 : i32
    return %arg0, %c0_i32, %c0_i32_0 : i32, i32, i32
  }
}

</mosaic_0001>

<bundles_post_ra>
// kernel: se_block.1
= control target key start
LH: loop header
LB: loop body
LE: loop exit
PB: predicated region body
PF: predicated region fallthrough
CT: control target
= control target key end

     0   :  { %s573_s12 = smov 0   ;;  %s646_s0 = inlined_call_operand.vmem [shape: f32[4,16,196], index: 0, kind: input, shape index: {}]   ;;  %s647_s1 = inlined_call_operand.vmem [shape: f32[16,2], index: 1, kind: input, shape index: {}]   ;;  %s648_s2 = inlined_call_operand.vmem [shape: f32[2,16], index: 2, kind: input, shape index: {}]   ;;  %s649_s3 = inlined_call_operand.vmem [shape: f32[4,16,196], index: 3, kind: output, shape index: {}]  }
   0x1 LB: > { %s493_s13 = sadd.s32 4294967295, %s549_s12   ;;  %p497_p0 = scmp.ge.s32.totalorder %s549_s12, 1  ;;  %s549_s12 = sphi %s573_s12, %s13_s12  }
   0x2   : > { %p139_p1 = scmp.lt.s32.totalorder %s549_s12, 3 }
   0x4   : > { %p140_p2 = pnand %p497_p0, %p139_p1 }
   0x5   : > { %s498_s14 = sshll.u32 (!%p140_p2), %s493_s13, 1 }
   0x6   : > { %143 = sbr.rel (%p140_p2) target bundleno = 715 (0x2cb), region = 32  ;;  %p166_p3 = scmp.lt.s32.totalorder (!%p140_p2), %s498_s14, 3 }
   0xb   : > { %s651_s14 = smov (!%p166_p3, %s498_s14), 3  ;;  %vm187_vm0 = vcmask 556032   ;;  %v551_v16 = vmov 0.0   ;;  %v209_v17 = vld [vmem:[%s647_s1 + $0x8] sm:$0xff]  ;;  %v208_v18 = vld [vmem:[%s647_s1] sm:$0xff]  ;;  %vm552_vm1 = vmmov 0   ;;  %v214_v19 = vlaneseq }
   0xc   : > { %s510_s15 = sshll.u32 %s651_s14, 5  ;;  %517 = vmatprep.subr.mxu0 %v551_v16  ;;  %524 = vmatprep.subr.mxu1 %v551_v16  ;;  %vm225_vm2 = vcmask 130112   ;;  %vm236_vm3 = vcmask 1041409   ;;  %vm238_vm4 = vcmask 130048   ;;  %v312_v40 = vld [vmem:[%s648_s2] sm:$0x3] }
   0xd   : > { %s170_s18 = scalar_lea.vmem %s646_s0, %s510_s15  ;;  %518 = vmatpush3.msra.mxu0 %v209_v17  ;;  %521 = vmatprep.mubr.msk.f32.mxu0 %vm552_vm1, %v551_v16  ;;  %v215_v20 = vand.u32 127, %v214_v19  ;;  %v217_v21 = vshrl.u32 %v214_v19, 7  ;;  %vm317_vm5 = vcmask 1041408   ;;  %vm313_vm6 = vcmask 15360   ;;  %s177_s27 = scalar_lea.vmem %s649_s3, %s510_s15 }
   0xe   : > { %v589_v0 = vld [vmem:[%s170_s18 + $0x20] sm:$0xff]  ;;  %v591_v1 = vld [vmem:[%s170_s18 + $0x28] sm:$0xff]  ;;  %v599_v5 = vld [vmem:[%s170_s18 + $0x30] sm:$0xff]  ;;  %519 = vmatprep.subr.mxu0 %v551_v16  ;;  %526 = vmatprep.mubr.msk.f32.mxu1 %vm552_vm1, %v551_v16 }
   0xf   : > { %v593_v2 = vld [vmem:[%s170_s18] sm:$0xff]  ;;  %v196_v3 = vsel %vm187_vm0, %v591_v1, 0.0  ;;  %v597_v4 = vld [vmem:[%s170_s18 + $0x8] sm:$0xff]  ;;  %v601_v6 = vld [vmem:[%s170_s18 + $0x38] sm:$0xff]  ;;  %520 = vmatpush3.msra.mxu0 %v208_v18  ;;  %v220_v22 = vadd.s32 4294967288, %v215_v20  ;;  %v218_v25 = vsub.s32 %v215_v20, %v217_v21  ;;  %525 = vmatpush3.msk.msra.mxu1 %vm317_vm5, %v312_v40  ;;  %v399_v49 = vsub.s32 0, %v217_v21 }
  0x10   : > { %v197_v7 = vadd.f32 %v196_v3, %v589_v0  ;;  %v188_v8 = vsel %vm187_vm0, %v597_v4, 0.0  ;;  %v200_v9 = vsel %vm187_vm0, %v601_v6, 0.0  ;;  %v608_v10 = vld [vmem:[%s170_s18 + $0x10] sm:$0xff]  ;;  %v610_v11 = vld [vmem:[%s170_s18 + $0x18] sm:$0xff]  ;;  %v410_v52 = vsub.s32 1, %v217_v21 }
  0x11   : > { %v189_v12 = vadd.f32 %v188_v8, %v593_v2  ;;  %v192_v13 = vsel %vm187_vm0, %v610_v11, 0.0  ;;  %v201_v14 = vadd.f32 %v200_v9, %v599_v5  ;;  %v223_v27 = vsub.s32 %v220_v22, %v217_v21 }
  0x12   : > { %198 = vadd.xlane.f32.xlu1 %v197_v7  ;;  %v193_v15 = vadd.f32 %v192_v13, %v608_v10 }
  0x13   : > { %190 = vadd.xlane.f32.xlu0 %v189_v12 }
  0x16   : > { %202 = vadd.xlane.f32.xlu1 %v201_v14 }
  0x17   : > { %194 = vadd.xlane.f32.xlu0 %v193_v15 }
  0x9b   : > { %v199_v23 = vpop.xlane.xlu1 %198 }
  0x9c   : > { %v191_v24 = vpop.xlane.xlu0 %190  ;;  %v206_v26 = vmul.f32 0.0051020407, %v199_v23 }
  0x9d   : > { %v204_v28 = vmul.f32 0.0051020407, %v191_v24 }
  0x9e   : > { %v230_v33 = vrot.slane %v206_v26, %v218_v25 }
  0x9f   : > { %v203_v29 = vpop.xlane.xlu1 %202  ;;  %v219_v35 = vrot.slane %v204_v28, %v218_v25 }
  0xa0   : > { %v207_v30 = vmul.f32 0.0051020407, %v203_v29  ;;  %v195_v31 = vpop.xlane.xlu0 %194 }
  0xa1   : > { %v205_v32 = vmul.f32 0.0051020407, %v195_v31 }
  0xa2   : > { %v234_v34 = vrot.slane %v207_v30, %v223_v27 }
  0xa3   : > { %v224_v36 = vrot.slane %v205_v32, %v223_v27 }
  0xa4   : > { %v235_v37 = vsel %vm225_vm2, %v234_v34, %v230_v33 }
  0xa5   : > { %v226_v38 = vsel %vm225_vm2, %v224_v36, %v219_v35 }
  0xa6   : > { %v237_v39 = vsel %vm236_vm3, %v235_v37, %v226_v38 }
  0xa7   : > { %522 = vmatmul.mubr.msk.f32.vlgmr.msra.gmra.mxu0 %vm238_vm4, %v237_v39 }
 0x167   : > { %v307_v41 = vpop.f32.mrf.mxu0 }
 0x168   : > { %v311_v42 = vmax.f32 %v307_v41, 0.0 }
 0x169   : > { %v523_v43 = vpop.f32.mrf.mxu0 }
 0x16a   : > { %527 = vmatmul.mubr.msk.f32.vlgmr.msra.gmra.mxu1 %vm313_vm6, %v311_v42 }
 0x22a   : > { %v387_v44 = vpop.f32.mrf.mxu1 }
 0x22b   : > { %v507_v45 = vmul.f32 -1.442695, %v387_v44 }
 0x22c   : > { %v528_v46 = vpop.f32.mrf.mxu1 }
 0x22d   : > { %539 = vpow2.f32 %v507_v45 }
 0x23a   : > { %v540_v47 = vpop.eup %539 }
 0x23b   : > { %v394_v48 = vadd.f32 1.0, %v540_v47 }
 0x23d   : > { %541 = vrcp.f32 %v394_v48 }
 0x24a   : > { %v542_v50 = vpop.eup %541 }
 0x24b   : > { %v400_v51 = vrot.slane %v542_v50, %v399_v49  ;;  %v411_v53 = vrot.slane %v542_v50, %v410_v52 }
 0x24d   : > { %406 = vbcast.lane.b32.xlu1 %v400_v51, 264  ;;  %402 = vbcast.lane.b32.xlu0 %v400_v51, 256 }
 0x251   : > { %413 = vbcast.lane.b32.xlu1 %v411_v53, 256 }
 0x255   : > { %417 = vbcast.lane.b32.xlu1 %v411_v53, 264 }
 0x2bf   : > { %v407_v54 = vpop.permute.xlu1 %406  ;;  %v403_v55 = vpop.permute.xlu0 %402 }
 0x2c0   : > { %v421_v56 = vmul.f32 %v407_v54, %v608_v10  ;;  %v422_v57 = vmul.f32 %v407_v54, %v610_v11  ;;  %v419_v58 = vmul.f32 %v403_v55, %v593_v2  ;;  %v420_v59 = vmul.f32 %v403_v55, %v597_v4 }
 0x2c2   : > { %429 = vst [vmem:[%s177_s27 + $0x10] sm:$0xff] %v421_v56  ;;  %430 = vst.msk [vmem:[%s177_s27 + $0x18] sm:$0xff] %vm187_vm0, %v422_v57 }
 0x2c3   : > { %427 = vst [vmem:[%s177_s27] sm:$0xff] %v419_v58  ;;  %428 = vst.msk [vmem:[%s177_s27 + $0x8] sm:$0xff] %vm187_vm0, %v420_v59  ;;  %v414_v60 = vpop.permute.xlu1 %413 }
 0x2c4   : > { %v423_v61 = vmul.f32 %v414_v60, %v589_v0  ;;  %v424_v62 = vmul.f32 %v414_v60, %v591_v1 }
 0x2c6   : > { %431 = vst [vmem:[%s177_s27 + $0x20] sm:$0xff] %v423_v61  ;;  %432 = vst.msk [vmem:[%s177_s27 + $0x28] sm:$0xff] %vm187_vm0, %v424_v62 }
 0x2c7   : > { %v418_v63 = vpop.permute.xlu1 %417 }
 0x2c8   : > { %v425_v3 = vmul.f32 %v418_v63, %v599_v5  ;;  %v426_v2 = vmul.f32 %v418_v63, %v601_v6 }
 0x2ca   : > { %433 = vst [vmem:[%s177_s27 + $0x30] sm:$0xff] %v425_v3  ;;  %434 = vst.msk [vmem:[%s177_s27 + $0x38] sm:$0xff] %vm187_vm0, %v426_v2 }
 0x2cb PF: > { %s13_s12 = sadd.s32 1, %s549_s12  }
 0x2cc   : > { %p10_p4 = scmp.ge.s32.totalorder %s13_s12, 4  }
 0x2ce   :  { %12 = sbr.rel (!%p10_p4) target bundleno = 1 (0x1), region = 62 }

</bundles_post_ra>
